<compile_context>
chip_gen: v5e
topology: v5e:2x2
jax: 0.10.0
libtpu: 0.0.40
codegen_flags: <defaults>
</compile_context>

<pallas_src>
import jax
import jax.numpy as jnp
from jax.experimental import pallas as pl
from jax.experimental.pallas import tpu as pltpu

IN_DIM = 28 * 28      # 784
H1_DIM = 256
H2_DIM = 64
OUT_DIM = 10
OUT_PAD = 128         # lane-dense padded output width
MAX_BLOCK_B = 2048    # max batch-tile rows (fits scoped VMEM on v5e/v6e/v7x)


def _round_up(n, m):
    return ((n + m - 1) // m) * m


def mlp_kernel(x_ref, w1_ref, b1_ref, w2_ref, b2_ref, w3_ref, b3_ref, o_ref):
    # x_ref: (TB, 784) f32 (cast to bf16 in-kernel), weights bf16, biases f32,
    # o_ref: (TB, 128) f32.
    x = x_ref[...].astype(jnp.bfloat16)                      # in-kernel cast
    h1 = jnp.dot(x, w1_ref[...], preferred_element_type=jnp.float32) + b1_ref[...]
    h1 = jnp.maximum(h1, 0.0).astype(jnp.bfloat16)           # relu(fc1)
    h2 = jnp.dot(h1, w2_ref[...], preferred_element_type=jnp.float32) + b2_ref[...]
    h2 = jnp.maximum(h2, 0.0).astype(jnp.bfloat16)           # relu(fc2)
    o_ref[...] = (
        jnp.dot(h2, w3_ref[...], preferred_element_type=jnp.float32) + b3_ref[...]
    )                                                        # fc3 (no activation)


def prepare_params(params):
    """One-time parameter prep (hoisted out of the per-call forward).

    params = (w1, b1, w2, b2, w3, b3), w_i of shape (in, out), b_i (1, out).
    Returns bf16 weights (w3 zero-padded 10 -> 128 lanes) and f32 biases.
    """
    w1, b1, w2, b2, w3, b3 = params
    w3p = jnp.zeros((H2_DIM, OUT_PAD), w3.dtype).at[:, :OUT_DIM].set(w3)
    b3p = jnp.zeros((1, OUT_PAD), b3.dtype).at[:, :OUT_DIM].set(b3)
    return (
        w1.astype(jnp.bfloat16), b1.astype(jnp.float32),
        w2.astype(jnp.bfloat16), b2.astype(jnp.float32),
        w3p.astype(jnp.bfloat16), b3p.astype(jnp.float32),
    )


def net_builder_forward(x, prepared_params, *, block_b=None):
    """Forward pass matching PyTorch Net_Builder. x: (B, 784) float.

    prepared_params: output of prepare_params(). Returns (B, 10) float32.
    """
    w1b, b1f, w2b, b2f, w3b, b3f = prepared_params
    B = x.shape[0]
    xf = x.astype(jnp.float32)   # no-op for f32 inputs; no bf16 HBM copy of x

    if block_b is None:
        # Largest tile <= MAX_BLOCK_B, while aiming for >= 2 grid steps so the
        # batch axis can shard across both TensorCores on v7x.
        block_b = max(8, min(MAX_BLOCK_B, _round_up((B + 1) // 2, 8)))

    grid = (pl.cdiv(B, block_b),)

    # Scoped-VMEM budget: double-buffered f32 x / f32 out tiles + resident
    # bf16 weights + f32 biases, with 2x headroom (v5e default is only 16 MiB).
    vmem_bytes = (
        2 * block_b * IN_DIM * 4
        + 2 * block_b * OUT_PAD * 4
        + 2 * 2 * (IN_DIM * H1_DIM + H1_DIM * H2_DIM + H2_DIM * OUT_PAD)
        + 2 * 4 * (H1_DIM + H2_DIM + OUT_PAD)
    )
    vmem_limit = int(min(48 * 1024 * 1024, 2 * vmem_bytes + (2 << 20)))

    resident = lambda i: (0, 0)   # weights/biases: same block every step -> VMEM-resident
    out_padded = pl.pallas_call(
        mlp_kernel,
        out_shape=jax.ShapeDtypeStruct((B, OUT_PAD), jnp.float32),
        grid=grid,
        in_specs=[
            pl.BlockSpec((block_b, IN_DIM), lambda i: (i, 0)),   # x tile (pipelined)
            pl.BlockSpec((IN_DIM, H1_DIM), resident),            # w1
            pl.BlockSpec((1, H1_DIM), resident),                 # b1
            pl.BlockSpec((H1_DIM, H2_DIM), resident),            # w2
            pl.BlockSpec((1, H2_DIM), resident),                 # b2
            pl.BlockSpec((H2_DIM, OUT_PAD), resident),           # w3 (padded)
            pl.BlockSpec((1, OUT_PAD), resident),                # b3 (padded)
        ],
        out_specs=pl.BlockSpec((block_b, OUT_PAD), lambda i: (i, 0)),
        compiler_params=pltpu.CompilerParams(
            dimension_semantics=("parallel",),
            vmem_limit_bytes=vmem_limit,
        ),
    )(xf, w1b, b1f, w2b, b2f, w3b, b3f)

    return out_padded[:, :OUT_DIM]


def init_params(key):
    """Deterministic init mimicking PyTorch Linear default (U[-1/sqrt(fan_in), +])."""
    dims = [(IN_DIM, H1_DIM), (H1_DIM, H2_DIM), (H2_DIM, OUT_DIM)]
    params = []
    for i, (fan_in, fan_out) in enumerate(dims):
        kw, kb = jax.random.split(jax.random.fold_in(key, i))
        bound = 1.0 / (fan_in ** 0.5)
        w = jax.random.uniform(kw, (fan_in, fan_out), jnp.float32, -bound, bound)
        b = jax.random.uniform(kb, (1, fan_out), jnp.float32, -bound, bound)
        params.extend([w, b])
    return tuple(params)


if __name__ == "__main__":
    key = jax.random.PRNGKey(0)
    k_x, k_p = jax.random.split(key)

    batch = 8
    x = jax.random.normal(k_x, (batch, IN_DIM), dtype=jnp.float32)
    params = init_params(k_p)
    prepped = prepare_params(params)   # one-time prep, outside the forward

    out = net_builder_forward(x, prepped)
    jax.block_until_ready(out)

    # Sanity check against plain-JAX f32 reference (loose tol: bf16 weights/acts).
    w1, b1, w2, b2, w3, b3 = params
    ref = jnp.maximum(x @ w1 + b1, 0.0)
    ref = jnp.maximum(ref @ w2 + b2, 0.0)
    ref = ref @ w3 + b3
    assert out.shape == (batch, OUT_DIM)
    assert jnp.allclose(out, ref, atol=5e-2, rtol=5e-2), (
        float(jnp.max(jnp.abs(out - ref)))
    )

    print("KERNEL_OK")
</pallas_src>

<mosaic_0001>
module attributes {stable_mosaic.version = 11 : i64} {
  func.func @mlp_kernel(%arg0: i32, %arg1: memref<8x784xf32, #tpu.memory_space<vmem>>, %arg2: memref<784x256xbf16, #tpu.memory_space<vmem>>, %arg3: memref<1x256xf32, #tpu.memory_space<vmem>>, %arg4: memref<256x64xbf16, #tpu.memory_space<vmem>>, %arg5: memref<1x64xf32, #tpu.memory_space<vmem>>, %arg6: memref<64x128xbf16, #tpu.memory_space<vmem>>, %arg7: memref<1x128xf32, #tpu.memory_space<vmem>>, %arg8: memref<8x128xf32, #tpu.memory_space<vmem>>) attributes {dimension_semantics = [#tpu.dimension_semantics<parallel>], iteration_bounds = array<i64: 1>, scalar_prefetch = 0 : i64, scratch_operands = 0 : i64, tpu.core_type = #tpu.core_type<tc>, window_params = [{transform_indices = @transform_0, window_bounds = array<i64: 8, 784>}, {pipeline_mode = #tpu.pipeline_mode<synchronous>, transform_indices = @transform_1, window_bounds = array<i64: 784, 256>}, {pipeline_mode = #tpu.pipeline_mode<synchronous>, transform_indices = @transform_2, window_bounds = array<i64: 1, 256>}, {pipeline_mode = #tpu.pipeline_mode<synchronous>, transform_indices = @transform_3, window_bounds = array<i64: 256, 64>}, {pipeline_mode = #tpu.pipeline_mode<synchronous>, transform_indices = @transform_4, window_bounds = array<i64: 1, 64>}, {pipeline_mode = #tpu.pipeline_mode<synchronous>, transform_indices = @transform_5, window_bounds = array<i64: 64, 128>}, {pipeline_mode = #tpu.pipeline_mode<synchronous>, transform_indices = @transform_6, window_bounds = array<i64: 1, 128>}, {transform_indices = @transform_7, window_bounds = array<i64: 8, 128>}]} {
    %c0 = arith.constant 0 : index
    %c0_0 = arith.constant 0 : index
    %0 = vector.load %arg1[%c0, %c0_0] : memref<8x784xf32, #tpu.memory_space<vmem>>, vector<8x784xf32>
    %1 = arith.truncf %0 : vector<8x784xf32> to vector<8x784xbf16>
    %c0_1 = arith.constant 0 : index
    %c0_2 = arith.constant 0 : index
    %2 = vector.load %arg2[%c0_1, %c0_2] : memref<784x256xbf16, #tpu.memory_space<vmem>>, vector<784x256xbf16>
    %cst = arith.constant dense<0.000000e+00> : vector<8x256xf32>
    %3 = tpu.matmul %1, %2, %cst {dimension_numbers = #tpu.dot_dimension_numbers<[1], [0], [0], [1], [0, 0, 1, 1], [], []>} : vector<8x784xbf16>, vector<784x256xbf16>, vector<8x256xf32> -> vector<8x256xf32>
    %c0_3 = arith.constant 0 : index
    %c0_4 = arith.constant 0 : index
    %4 = vector.load %arg3[%c0_3, %c0_4] : memref<1x256xf32, #tpu.memory_space<vmem>>, vector<1x256xf32>
    %5 = vector.broadcast %4 : vector<1x256xf32> to vector<8x256xf32>
    %6 = arith.addf %3, %5 : vector<8x256xf32>
    %cst_5 = arith.constant 0.000000e+00 : f32
    %7 = vector.broadcast %cst_5 : f32 to vector<8x256xf32>
    %8 = arith.maximumf %6, %7 : vector<8x256xf32>
    %9 = arith.truncf %8 : vector<8x256xf32> to vector<8x256xbf16>
    %c0_6 = arith.constant 0 : index
    %c0_7 = arith.constant 0 : index
    %10 = vector.load %arg4[%c0_6, %c0_7] : memref<256x64xbf16, #tpu.memory_space<vmem>>, vector<256x64xbf16>
    %cst_8 = arith.constant dense<0.000000e+00> : vector<8x64xf32>
    %11 = tpu.matmul %9, %10, %cst_8 {dimension_numbers = #tpu.dot_dimension_numbers<[1], [0], [0], [1], [0, 0, 1, 1], [], []>} : vector<8x256xbf16>, vector<256x64xbf16>, vector<8x64xf32> -> vector<8x64xf32>
    %c0_9 = arith.constant 0 : index
    %c0_10 = arith.constant 0 : index
    %12 = vector.load %arg5[%c0_9, %c0_10] : memref<1x64xf32, #tpu.memory_space<vmem>>, vector<1x64xf32>
    %13 = vector.broadcast %12 : vector<1x64xf32> to vector<8x64xf32>
    %14 = arith.addf %11, %13 : vector<8x64xf32>
    %cst_11 = arith.constant 0.000000e+00 : f32
    %15 = vector.broadcast %cst_11 : f32 to vector<8x64xf32>
    %16 = arith.maximumf %14, %15 : vector<8x64xf32>
    %17 = arith.truncf %16 : vector<8x64xf32> to vector<8x64xbf16>
    %c0_12 = arith.constant 0 : index
    %c0_13 = arith.constant 0 : index
    %18 = vector.load %arg6[%c0_12, %c0_13] : memref<64x128xbf16, #tpu.memory_space<vmem>>, vector<64x128xbf16>
    %cst_14 = arith.constant dense<0.000000e+00> : vector<8x128xf32>
    %19 = tpu.matmul %17, %18, %cst_14 {dimension_numbers = #tpu.dot_dimension_numbers<[1], [0], [0], [1], [0, 0, 1, 1], [], []>} : vector<8x64xbf16>, vector<64x128xbf16>, vector<8x128xf32> -> vector<8x128xf32>
    %c0_15 = arith.constant 0 : index
    %c0_16 = arith.constant 0 : index
    %20 = vector.load %arg7[%c0_15, %c0_16] : memref<1x128xf32, #tpu.memory_space<vmem>>, vector<1x128xf32>
    %21 = vector.broadcast %20 : vector<1x128xf32> to vector<8x128xf32>
    %22 = arith.addf %19, %21 : vector<8x128xf32>
    %c0_17 = arith.constant 0 : index
    %c0_18 = arith.constant 0 : index
    %23 = vector.load %arg8[%c0_17, %c0_18] : memref<8x128xf32, #tpu.memory_space<vmem>>, vector<8x128xf32>
    tpu.vector_store %arg8[%c0_17, %c0_18], %22 {strides = array<i32>} : memref<8x128xf32, #tpu.memory_space<vmem>>, vector<8x128xf32>,
    return
  }
  func.func @transform_0(%arg0: i32) -> (i32, i32) {
    %c0_i32 = arith.constant 0 : i32
    %c0_i32_0 = arith.constant 0 : i32
    return %arg0, %c0_i32 : i32, i32
  }
  func.func @transform_1(%arg0: i32) -> (i32, i32) {
    %c0_i32 = arith.constant 0 : i32
    %c0_i32_0 = arith.constant 0 : i32
    %c0_i32_1 = arith.constant 0 : i32
    return %c0_i32, %c0_i32_0 : i32, i32
  }
  func.func @transform_2(%arg0: i32) -> (i32, i32) {
    %c0_i32 = arith.constant 0 : i32
    %c0_i32_0 = arith.constant 0 : i32
    %c0_i32_1 = arith.constant 0 : i32
    return %c0_i32, %c0_i32_0 : i32, i32
  }
  func.func @transform_3(%arg0: i32) -> (i32, i32) {
    %c0_i32 = arith.constant 0 : i32
    %c0_i32_0 = arith.constant 0 : i32
    %c0_i32_1 = arith.constant 0 : i32
    return %c0_i32, %c0_i32_0 : i32, i32
  }
  func.func @transform_4(%arg0: i32) -> (i32, i32) {
    %c0_i32 = arith.constant 0 : i32
    %c0_i32_0 = arith.constant 0 : i32
    %c0_i32_1 = arith.constant 0 : i32
    return %c0_i32, %c0_i32_0 : i32, i32
  }
  func.func @transform_5(%arg0: i32) -> (i32, i32) {
    %c0_i32 = arith.constant 0 : i32
    %c0_i32_0 = arith.constant 0 : i32
    %c0_i32_1 = arith.constant 0 : i32
    return %c0_i32, %c0_i32_0 : i32, i32
  }
  func.func @transform_6(%arg0: i32) -> (i32, i32) {
    %c0_i32 = arith.constant 0 : i32
    %c0_i32_0 = arith.constant 0 : i32
    %c0_i32_1 = arith.constant 0 : i32
    return %c0_i32, %c0_i32_0 : i32, i32
  }
  func.func @transform_7(%arg0: i32) -> (i32, i32) {
    %c0_i32 = arith.constant 0 : i32
    %c0_i32_0 = arith.constant 0 : i32
    return %arg0, %c0_i32 : i32, i32
  }
}

</mosaic_0001>

<bundles_post_ra>
// kernel: tpu_custom_call.1
= control target key start
LH: loop header
LB: loop body
LE: loop exit
PB: predicated region body
PF: predicated region fallthrough
CT: control target
= control target key end

     0   :  { %12 = vsyncpa [#allocation3], 0  ;;  %s1894_s0 = inlined_call_operand.vmem [shape: f32[8,784], index: 0, kind: input, shape index: {}]   ;;  %s1895_s1 = inlined_call_operand.hbm [shape: bf16[784,256], index: 1, kind: input, shape index: {}]   ;;  %s1896_s2 = inlined_call_operand.vmem [shape: f32[1,256], index: 2, kind: input, shape index: {}]   ;;  %s1897_s3 = inlined_call_operand.vmem [shape: bf16[256,64], index: 3, kind: input, shape index: {}]   ;;  %s1898_s4 = inlined_call_operand.vmem [shape: f32[1,64], index: 4, kind: input, shape index: {}]   ;;  %s1899_s5 = inlined_call_operand.vmem [shape: bf16[64,128], index: 5, kind: input, shape index: {}]   ;;  %s1900_s6 = inlined_call_operand.vmem [shape: f32[1,128], index: 6, kind: input, shape index: {}]   ;;  %s1901_s7 = inlined_call_operand.hbm [shape: f32[8,128], index: 7, kind: output, shape index: {}]  }
   0x1   :  { %13 = vsyncpa [#allocation4], 0  ;;  %s20_s26 = sshll.u32 %s1895_s1, 4  ;;  %s1724_s27 = smov [#allocation2]   ;;  %s21_s26 = int_to_ptr.hbm [resolvable:$true] %s20_s26 }
   0x2   :  { %s22_s28 = sshll.u32 %s1724_s27, 4  ;;  %s1725_s29 = smov 128   ;;  %s23_s28 = int_to_ptr.vmem [resolvable:$true] %s22_s28 }
   0x3   :  { %s1726_s30 = smov 8  }
   0x4   :  { %28 = dma.hbm_to_vmem [thread:$0]  %s21_s26, 12544, %s23_s28, [#allocation3], %s1725_s29, %s1725_s29, %s1726_s30  }
   0x5   :  { %1720 = dma.done.wait [#allocation3], 12544  }
   0x6   :  { %1721 = vsyncadd [#allocation3], 4294954752  ;;  %v1131_v0 = vld [vmem:[#allocation2 + $0x70] sm:$0xf]  ;;  %v1563_v1 = vld [vmem:[#allocation2 + $0x74] sm:$0xf0] }
   0x7   :  { %v1259_v2 = vld [vmem:[#allocation2 + $0x170] sm:$0xf]  ;;  %v1132_v3 = vor.u32 %v1563_v1, %v1131_v0  ;;  %v1595_v4 = vld [vmem:[#allocation2 + $0x174] sm:$0xf0]  ;;  %v1123_v11 = vld [vmem:[#allocation2 + $0x60] sm:$0xf] }
   0x8   :  { %v1323_v5 = vld [vmem:[#allocation2 + $0x1f0] sm:$0xf]  ;;  %v1611_v6 = vld [vmem:[#allocation2 + $0x1f4] sm:$0xf0]  ;;  %v1260_v7 = vor.u32 %v1595_v4, %v1259_v2  ;;  %v1561_v13 = vld [vmem:[#allocation2 + $0x64] sm:$0xf0] }
   0x9   :  { %v1324_v8 = vor.u32 %v1611_v6, %v1323_v5  ;;  %v1195_v9 = vld [vmem:[#allocation2 + $0xf0] sm:$0xf]  ;;  %v1579_v10 = vld [vmem:[#allocation2 + $0xf4] sm:$0xf0]  ;;  %656 = vmatpush.bf16.msra.mxu0 %v1132_v3  ;;  %v1251_v14 = vld [vmem:[#allocation2 + $0x160] sm:$0xf]  ;;  %v1124_v16 = vor.u32 %v1561_v13, %v1123_v11 }
   0xa   :  { %v1196_v12 = vor.u32 %v1579_v10, %v1195_v9  ;;  %v1593_v15 = vld [vmem:[#allocation2 + $0x164] sm:$0xf0]  ;;  %682 = vmatpush.bf16.msra.mxu2 %v1260_v7  ;;  %v1315_v18 = vld [vmem:[#allocation2 + $0x1e0] sm:$0xf]  ;;  %v1115_v23 = vld [vmem:[#allocation2 + $0x50] sm:$0xf] }
   0xb   :  { %695 = vmatpush.bf16.msra.mxu3 %v1324_v8  ;;  %v1252_v17 = vor.u32 %v1593_v15, %v1251_v14  ;;  %v1609_v19 = vld [vmem:[#allocation2 + $0x1e4] sm:$0xf0]  ;;  %v1187_v20 = vld [vmem:[#allocation2 + $0xe0] sm:$0xf]  ;;  %v1559_v24 = vld [vmem:[#allocation2 + $0x54] sm:$0xf0] }
   0xc   :  { %669 = vmatpush.bf16.msra.mxu1 %v1196_v12  ;;  %v1316_v21 = vor.u32 %v1609_v19, %v1315_v18  ;;  %v1577_v22 = vld [vmem:[#allocation2 + $0xe4] sm:$0xf0]  ;;  %v1243_v26 = vld [vmem:[#allocation2 + $0x150] sm:$0xf]  ;;  %v1591_v27 = vld [vmem:[#allocation2 + $0x154] sm:$0xf0]  ;;  %v1116_v29 = vor.u32 %v1559_v24, %v1115_v23 }
   0xd   :  { %v1188_v25 = vor.u32 %v1577_v22, %v1187_v20  ;;  %v1307_v28 = vld [vmem:[#allocation2 + $0x1d0] sm:$0xf]  ;;  %657 = vmatpush.bf16.msra.mxu0 %v1124_v16  ;;  %v1607_v30 = vld [vmem:[#allocation2 + $0x1d4] sm:$0xf0]  ;;  %v1244_v33 = vor.u32 %v1591_v27, %v1243_v26  ;;  %v1107_v35 = vld [vmem:[#allocation2 + $0x40] sm:$0xf] }
   0xe   :  { %v1179_v31 = vld [vmem:[#allocation2 + $0xd0] sm:$0xf]  ;;  %v1575_v32 = vld [vmem:[#allocation2 + $0xd4] sm:$0xf0]  ;;  %683 = vmatpush.bf16.msra.mxu2 %v1252_v17  ;;  %v1308_v34 = vor.u32 %v1607_v30, %v1307_v28  ;;  %v1557_v36 = vld [vmem:[#allocation2 + $0x44] sm:$0xf0] }
   0xf   :  { %696 = vmatpush.bf16.msra.mxu3 %v1316_v21  ;;  %v1235_v37 = vld [vmem:[#allocation2 + $0x140] sm:$0xf]  ;;  %v1180_v38 = vor.u32 %v1575_v32, %v1179_v31  ;;  %v1589_v39 = vld [vmem:[#allocation2 + $0x144] sm:$0xf0]  ;;  %v1108_v44 = vor.u32 %v1557_v36, %v1107_v35  ;;  %v1099_v47 = vld [vmem:[#allocation2 + $0x30] sm:$0xf] }
  0x10   :  { %670 = vmatpush.bf16.msra.mxu1 %v1188_v25  ;;  %v1299_v40 = vld [vmem:[#allocation2 + $0x1c0] sm:$0xf]  ;;  %v1605_v41 = vld [vmem:[#allocation2 + $0x1c4] sm:$0xf0]  ;;  %v1236_v45 = vor.u32 %v1589_v39, %v1235_v37  ;;  %v1555_v48 = vld [vmem:[#allocation2 + $0x34] sm:$0xf0] }
  0x11   :  { %v1171_v42 = vld [vmem:[#allocation2 + $0xc0] sm:$0xf]  ;;  %v1573_v43 = vld [vmem:[#allocation2 + $0xc4] sm:$0xf0]  ;;  %658 = vmatpush.bf16.msra.mxu0 %v1116_v29  ;;  %v1300_v46 = vor.u32 %v1605_v41, %v1299_v40  ;;  %v1227_v49 = vld [vmem:[#allocation2 + $0x130] sm:$0xf]  ;;  %v1100_v56 = vor.u32 %v1555_v48, %v1099_v47 }
  0x12   :  { %684 = vmatpush.bf16.msra.mxu2 %v1244_v33  ;;  %v1172_v50 = vor.u32 %v1573_v43, %v1171_v42  ;;  %v1587_v51 = vld [vmem:[#allocation2 + $0x134] sm:$0xf0]  ;;  %v1291_v52 = vld [vmem:[#allocation2 + $0x1b0] sm:$0xf]  ;;  %v1091_v59 = vld [vmem:[#allocation2 + $0x20] sm:$0xf] }
  0x13   :  { %697 = vmatpush.bf16.msra.mxu3 %v1308_v34  ;;  %v1603_v53 = vld [vmem:[#allocation2 + $0x1b4] sm:$0xf0]  ;;  %v1163_v54 = vld [vmem:[#allocation2 + $0xb0] sm:$0xf]  ;;  %v1228_v57 = vor.u32 %v1587_v51, %v1227_v49  ;;  %v1553_v60 = vld [vmem:[#allocation2 + $0x24] sm:$0xf0] }
  0x14   :  { %671 = vmatpush.bf16.msra.mxu1 %v1180_v38  ;;  %v1571_v55 = vld [vmem:[#allocation2 + $0xb4] sm:$0xf0]  ;;  %v1292_v58 = vor.u32 %v1603_v53, %v1291_v52  ;;  %v1219_v61 = vld [vmem:[#allocation2 + $0x120] sm:$0xf]  ;;  %v1585_v63 = vld [vmem:[#allocation2 + $0x124] sm:$0xf0]  ;;  %v1092_v4 = vor.u32 %v1553_v60, %v1091_v59 }
  0x15   :  { %659 = vmatpush.bf16.msra.mxu0 %v1108_v44  ;;  %v1164_v62 = vor.u32 %v1571_v55, %v1163_v54  ;;  %v1283_v0 = vld [vmem:[#allocation2 + $0x1a0] sm:$0xf]  ;;  %v1601_v1 = vld [vmem:[#allocation2 + $0x1a4] sm:$0xf0]  ;;  %v1220_v5 = vor.u32 %v1585_v63, %v1219_v61  ;;  %v1083_v7 = vld [vmem:[#allocation2 + $0x10] sm:$0xf] }
  0x16   :  { %685 = vmatpush.bf16.msra.mxu2 %v1236_v45  ;;  %v1155_v2 = vld [vmem:[#allocation2 + $0xa0] sm:$0xf]  ;;  %v1569_v3 = vld [vmem:[#allocation2 + $0xa4] sm:$0xf0]  ;;  %v1284_v6 = vor.u32 %v1601_v1, %v1283_v0  ;;  %v1551_v8 = vld [vmem:[#allocation2 + $0x14] sm:$0xf0] }
  0x17   :  { %698 = vmatpush.bf16.msra.mxu3 %v1300_v46  ;;  %v1211_v9 = vld [vmem:[#allocation2 + $0x110] sm:$0xf]  ;;  %v1156_v10 = vor.u32 %v1569_v3, %v1155_v2  ;;  %v1583_v11 = vld [vmem:[#allocation2 + $0x114] sm:$0xf0]  ;;  %v1084_v16 = vor.u32 %v1551_v8, %v1083_v7  ;;  %v1075_v17 = vld [vmem:[#allocation2] sm:$0xf] }
  0x18   :  { %672 = vmatpush.bf16.msra.mxu1 %v1172_v50  ;;  %v1275_v12 = vld [vmem:[#allocation2 + $0x190] sm:$0xf]  ;;  %v1599_v13 = vld [vmem:[#allocation2 + $0x194] sm:$0xf0]  ;;  %v1549_v18 = vld [vmem:[#allocation2 + $0x4] sm:$0xf0]  ;;  %v1212_v20 = vor.u32 %v1583_v11, %v1211_v9 }
  0x19   :  { %660 = vmatpush.bf16.msra.mxu0 %v1100_v56  ;;  %v1147_v14 = vld [vmem:[#allocation2 + $0x90] sm:$0xf]  ;;  %v1567_v15 = vld [vmem:[#allocation2 + $0x94] sm:$0xf0]  ;;  %v1203_v19 = vld [vmem:[#allocation2 + $0x100] sm:$0xf]  ;;  %v1276_v21 = vor.u32 %v1599_v13, %v1275_v12  ;;  %v1076_v32 = vor.u32 %v1549_v18, %v1075_v17 }
  0x1a   :  { %686 = vmatpush.bf16.msra.mxu2 %v1228_v57  ;;  %v1581_v22 = vld [vmem:[#allocation2 + $0x104] sm:$0xf0]  ;;  %v1267_v23 = vld [vmem:[#allocation2 + $0x180] sm:$0xf]  ;;  %v1148_v25 = vor.u32 %v1567_v15, %v1147_v14  ;;  %v1387_v26 = vld [vmem:[#allocation2 + $0x270] sm:$0xf] }
  0x1b   :  { %699 = vmatpush.bf16.msra.mxu3 %v1292_v58  ;;  %v1597_v24 = vld [vmem:[#allocation2 + $0x184] sm:$0xf0]  ;;  %v1627_v27 = vld [vmem:[#allocation2 + $0x274] sm:$0xf0]  ;;  %v1562_v28 = vld [vmem:[#allocation2 + $0x74] sm:$0xf]  ;;  %v1204_v36 = vor.u32 %v1581_v22, %v1203_v19 }
  0x1c   :  { %673 = vmatpush.bf16.msra.mxu1 %v1164_v62  ;;  %v1133_v29 = vld [vmem:[#allocation2 + $0x78] sm:$0xf0]  ;;  %v1139_v30 = vld [vmem:[#allocation2 + $0x80] sm:$0xf]  ;;  %v1565_v31 = vld [vmem:[#allocation2 + $0x84] sm:$0xf0]  ;;  %v1268_v37 = vor.u32 %v1597_v24, %v1267_v23  ;;  %v1388_v41 = vor.u32 %v1627_v27, %v1387_v26 }
  0x1d   :  { %661 = vmatpush.bf16.msra.mxu0 %v1092_v4  ;;  %v46_v33 = vld [vmem:[%s1894_s0 + $0x10] sm:$0xff]  ;;  %v1459_v34 = vld [vmem:[#allocation2 + $0x300] sm:$0xf]  ;;  %v1645_v35 = vld [vmem:[#allocation2 + $0x304] sm:$0xf0]  ;;  %v1136_v42 = vor.u32 %v1562_v28, %v1133_v29  ;;  %v1140_v46 = vor.u32 %v1565_v31, %v1139_v30  ;;  %vm652_vm0 = vcmask 130048  }
  0x1e   :  { %687 = vmatpush.bf16.msra.mxu2 %v1220_v5  ;;  %v1451_v38 = vld [vmem:[#allocation2 + $0x2f0] sm:$0xf]  ;;  %v1643_v39 = vld [vmem:[#allocation2 + $0x2f4] sm:$0xf0]  ;;  %v1578_v40 = vld [vmem:[#allocation2 + $0xf4] sm:$0xf]  ;;  %v1460_v47 = vor.u32 %v1645_v35, %v1459_v34  ;;  %v1777_v51 = vpack.c.bf16 %v46_v33, %v46_v33 }
  0x1f   :  { %700 = vmatpush.bf16.msra.mxu3 %v1284_v6  ;;  %v1197_v43 = vld [vmem:[#allocation2 + $0xf8] sm:$0xf0]  ;;  %v1379_v44 = vld [vmem:[#allocation2 + $0x260] sm:$0xf]  ;;  %v1625_v48 = vld [vmem:[#allocation2 + $0x264] sm:$0xf0]  ;;  %v1452_v52 = vor.u32 %v1643_v39, %v1451_v38 }
  0x20   :  { %674 = vmatpush.bf16.msra.mxu1 %v1156_v10  ;;  %v44_v45 = vld [vmem:[%s1894_s0] sm:$0xff]  ;;  %v1125_v50 = vld [vmem:[#allocation2 + $0x68] sm:$0xf0]  ;;  %v47_v53 = vld [vmem:[%s1894_s0 + $0x18] sm:$0xff]  ;;  %v1200_v55 = vor.u32 %v1578_v40, %v1197_v43  ;;  %v1380_v59 = vor.u32 %v1625_v48, %v1379_v44  ;;  %vm1038_vm1 = vcmask 523264   ;;  %s1727_s15 = smov [#allocation5]  }
  0x21   :  { %662 = vmatpush.bf16.msra.mxu0 %v1084_v16  ;;  %v1560_v49 = vld [vmem:[#allocation2 + $0x64] sm:$0xf]  ;;  %v45_v54 = vld [vmem:[%s1894_s0 + $0x8] sm:$0xff]  ;;  %v1443_v56 = vld [vmem:[#allocation2 + $0x2e0] sm:$0xf]  ;;  %v1785_v58 = vpack.c.bf16 %v44_v45, %v44_v45  ;;  %v1787_v3 = vpack.c.bf16 %v47_v53, %v47_v53  ;;  %s1061_s16 = sshll.u32 %s1727_s15, 4  ;;  %s1062_s16 = int_to_ptr.vmem [resolvable:$true] %s1061_s16 }
  0x22   :  { %688 = vmatpush.bf16.msra.mxu2 %v1212_v20  ;;  %v1641_v57 = vld [vmem:[#allocation2 + $0x2e4] sm:$0xf0]  ;;  %v1128_v60 = vor.u32 %v1560_v49, %v1125_v50  ;;  %v1576_v61 = vld [vmem:[#allocation2 + $0xe4] sm:$0xf]  ;;  %v1189_v62 = vld [vmem:[#allocation2 + $0xe8] sm:$0xf0]  ;;  %v1789_v4 = vpack.c.bf16 %v45_v54, %v45_v54 }
  0x23   :  { %701 = vmatpush.bf16.msra.mxu3 %v1276_v21  ;;  %v1371_v63 = vld [vmem:[#allocation2 + $0x250] sm:$0xf]  ;;  %v1623_v0 = vld [vmem:[#allocation2 + $0x254] sm:$0xf0]  ;;  %v1558_v1 = vld [vmem:[#allocation2 + $0x54] sm:$0xf]  ;;  %v1444_v5 = vor.u32 %v1641_v57, %v1443_v56  ;;  %v1192_v6 = vor.u32 %v1576_v61, %v1189_v62 }
  0x24   :  { %675 = vmatpush.bf16.msra.mxu1 %v1148_v25  ;;  %v1117_v2 = vld [vmem:[#allocation2 + $0x58] sm:$0xf0]  ;;  %v1435_v7 = vld [vmem:[#allocation2 + $0x2d0] sm:$0xf]  ;;  %v1639_v8 = vld [vmem:[#allocation2 + $0x2d4] sm:$0xf0]  ;;  %v1372_v9 = vor.u32 %v1623_v0, %v1371_v63 }
  0x25   :  { %663 = vmatpush.bf16.msra.mxu0 %v1076_v32  ;;  %v1120_v10 = vor.u32 %v1558_v1, %v1117_v2  ;;  %v1574_v11 = vld [vmem:[#allocation2 + $0xd4] sm:$0xf]  ;;  %v1181_v12 = vld [vmem:[#allocation2 + $0xd8] sm:$0xf0]  ;;  %v1363_v13 = vld [vmem:[#allocation2 + $0x240] sm:$0xf]  ;;  %v1436_v17 = vor.u32 %v1639_v8, %v1435_v7 }
  0x26   :  { %689 = vmatpush.bf16.msra.mxu2 %v1204_v36  ;;  %v1621_v14 = vld [vmem:[#allocation2 + $0x244] sm:$0xf0]  ;;  %v1556_v15 = vld [vmem:[#allocation2 + $0x44] sm:$0xf]  ;;  %v1109_v16 = vld [vmem:[#allocation2 + $0x48] sm:$0xf0]  ;;  %v1184_v18 = vor.u32 %v1574_v11, %v1181_v12 }
  0x27   :  { %702 = vmatpush.bf16.msra.mxu3 %v1268_v37  ;;  %v1427_v19 = vld [vmem:[#allocation2 + $0x2c0] sm:$0xf]  ;;  %v1637_v20 = vld [vmem:[#allocation2 + $0x2c4] sm:$0xf0]  ;;  %v1364_v21 = vor.u32 %v1621_v14, %v1363_v13  ;;  %v1112_v22 = vor.u32 %v1556_v15, %v1109_v16  ;;  %v1572_v23 = vld [vmem:[#allocation2 + $0xc4] sm:$0xf] }
  0x28   :  { %676 = vmatpush.bf16.msra.mxu1 %v1140_v46  ;;  %664 = vmatmul.bf16.vlgmr.msra.gmra.mxu0 %v1785_v58  ;;  %v1173_v24 = vld [vmem:[#allocation2 + $0xc8] sm:$0xf0]  ;;  %v1355_v25 = vld [vmem:[#allocation2 + $0x230] sm:$0xf]  ;;  %v1619_v26 = vld [vmem:[#allocation2 + $0x234] sm:$0xf0]  ;;  %v1428_v29 = vor.u32 %v1637_v20, %v1427_v19 }
  0x29   :  { %708 = vmatpush.bf16.msrb.mxu0 %v1388_v41  ;;  %690 = vmatmul.bf16.vlgmr.msra.gmra.mxu2 %v1777_v51  ;;  %v1554_v27 = vld [vmem:[#allocation2 + $0x34] sm:$0xf]  ;;  %v1101_v28 = vld [vmem:[#allocation2 + $0x38] sm:$0xf0]  ;;  %v1176_v30 = vor.u32 %v1572_v23, %v1173_v24  ;;  %v1419_v31 = vld [vmem:[#allocation2 + $0x2b0] sm:$0xf]  ;;  %v1356_v34 = vor.u32 %v1619_v26, %v1355_v25 }
  0x2a   :  { %741 = vmatpush.bf16.msrb.mxu2 %v1460_v47  ;;  %703 = vmatmul.bf16.vlgmr.msra.gmra.mxu3 %v1787_v3  ;;  %v1635_v32 = vld [vmem:[#allocation2 + $0x2b4] sm:$0xf0]  ;;  %v50_v33 = vld [vmem:[%s1894_s0 + $0x30] sm:$0xff]  ;;  %v1104_v35 = vor.u32 %v1554_v27, %v1101_v28  ;;  %v1165_v37 = vld [vmem:[#allocation2 + $0xb8] sm:$0xf0] }
  0x2b   :  { %747 = vmatpush.bf16.msrb.mxu3 %v1136_v42  ;;  %677 = vmatmul.bf16.vlgmr.msra.gmra.mxu1 %v1789_v4  ;;  %v1570_v36 = vld [vmem:[#allocation2 + $0xb4] sm:$0xf]  ;;  %v1347_v38 = vld [vmem:[#allocation2 + $0x220] sm:$0xf]  ;;  %v1617_v39 = vld [vmem:[#allocation2 + $0x224] sm:$0xf0]  ;;  %v1420_v42 = vor.u32 %v1635_v32, %v1419_v31  ;;  %v1798_v43 = vpack.c.bf16 %v50_v33, %v50_v33 }
  0x2c   :  { %721 = vmatpush.bf16.msrb.mxu1 %v1452_v52  ;;  %v1552_v40 = vld [vmem:[#allocation2 + $0x24] sm:$0xf]  ;;  %v1093_v41 = vld [vmem:[#allocation2 + $0x28] sm:$0xf0]  ;;  %v1168_v44 = vor.u32 %v1570_v36, %v1165_v37  ;;  %v1411_v45 = vld [vmem:[#allocation2 + $0x2a0] sm:$0xf]  ;;  %v1348_v47 = vor.u32 %v1617_v39, %v1347_v38 }
  0x2d   :  { %709 = vmatpush.bf16.msrb.mxu0 %v1380_v59  ;;  %v1633_v46 = vld [vmem:[#allocation2 + $0x2a4] sm:$0xf0]  ;;  %v1096_v48 = vor.u32 %v1552_v40, %v1093_v41  ;;  %v1568_v49 = vld [vmem:[#allocation2 + $0xa4] sm:$0xf]  ;;  %v1157_v50 = vld [vmem:[#allocation2 + $0xa8] sm:$0xf0] }
  0x2e   :  { %760 = vmatpush.bf16.msra.mxu2 %v1200_v55  ;;  %v1339_v52 = vld [vmem:[#allocation2 + $0x210] sm:$0xf]  ;;  %v1615_v53 = vld [vmem:[#allocation2 + $0x214] sm:$0xf0]  ;;  %v1550_v54 = vld [vmem:[#allocation2 + $0x14] sm:$0xf]  ;;  %v1412_v56 = vor.u32 %v1633_v46, %v1411_v45  ;;  %v1160_v57 = vor.u32 %v1568_v49, %v1157_v50 }
  0x2f   :  { %748 = vmatpush.bf16.msrb.mxu3 %v1128_v60  ;;  %v1085_v55 = vld [vmem:[#allocation2 + $0x18] sm:$0xf0]  ;;  %v1403_v59 = vld [vmem:[#allocation2 + $0x290] sm:$0xf]  ;;  %v1631_v60 = vld [vmem:[#allocation2 + $0x294] sm:$0xf0]  ;;  %v1340_v62 = vor.u32 %v1615_v53, %v1339_v52 }
  0x30   :  { %722 = vmatpush.bf16.msrb.mxu1 %v1444_v5  ;;  %v1566_v61 = vld [vmem:[#allocation2 + $0x94] sm:$0xf]  ;;  %v1088_v63 = vor.u32 %v1550_v54, %v1085_v55  ;;  %v1149_v0 = vld [vmem:[#allocation2 + $0x98] sm:$0xf0]  ;;  %v1331_v1 = vld [vmem:[#allocation2 + $0x200] sm:$0xf]  ;;  %v1404_v8 = vor.u32 %v1631_v60, %v1403_v59 }
  0x31   :  { %710 = vmatpush.bf16.msrb.mxu0 %v1372_v9  ;;  %v1613_v2 = vld [vmem:[#allocation2 + $0x204] sm:$0xf0]  ;;  %v1548_v5 = vld [vmem:[#allocation2 + $0x4] sm:$0xf]  ;;  %v1594_v7 = vld [vmem:[#allocation2 + $0x174] sm:$0xf]  ;;  %v1152_v12 = vor.u32 %v1566_v61, %v1149_v0 }
  0x32   :  { %761 = vmatpush.bf16.msra.mxu2 %v1192_v6  ;;  %v1077_v6 = vld [vmem:[#allocation2 + $0x8] sm:$0xf0]  ;;  %v1261_v9 = vld [vmem:[#allocation2 + $0x178] sm:$0xf0]  ;;  %v1395_v13 = vld [vmem:[#allocation2 + $0x280] sm:$0xf]  ;;  %v1332_v16 = vor.u32 %v1613_v2, %v1331_v1 }
  0x33   :  { %749 = vmatpush.bf16.msrb.mxu3 %v1120_v10  ;;  %v1626_v10 = vld [vmem:[#allocation2 + $0x274] sm:$0xf]  ;;  %v1389_v11 = vld [vmem:[#allocation2 + $0x278] sm:$0xf0]  ;;  %v1629_v14 = vld [vmem:[#allocation2 + $0x284] sm:$0xf0] }
  0x34   :  { %723 = vmatpush.bf16.msrb.mxu1 %v1436_v17  ;;  %v48_v15 = vld [vmem:[%s1894_s0 + $0x20] sm:$0xff]  ;;  %v1080_v17 = vor.u32 %v1548_v5, %v1077_v6  ;;  %v1141_v19 = vld [vmem:[#allocation2 + $0x88] sm:$0xf0]  ;;  %v1610_v20 = vld [vmem:[#allocation2 + $0x1f4] sm:$0xf]  ;;  %v1396_v26 = vor.u32 %v1629_v14, %v1395_v13 }
  0x35   :  { %711 = vmatpush.bf16.msrb.mxu0 %v1364_v21  ;;  %v1264_v21 = vor.u32 %v1594_v7, %v1261_v9  ;;  %v1325_v23 = vld [vmem:[#allocation2 + $0x1f8] sm:$0xf0]  ;;  %v1642_v24 = vld [vmem:[#allocation2 + $0x2f4] sm:$0xf]  ;;  %v49_v27 = vld [vmem:[%s1894_s0 + $0x28] sm:$0xff] }
  0x36   :  { %762 = vmatpush.bf16.msra.mxu2 %v1184_v18  ;;  %v1564_v18 = vld [vmem:[#allocation2 + $0x84] sm:$0xf]  ;;  %v1453_v25 = vld [vmem:[#allocation2 + $0x2f8] sm:$0xf0]  ;;  %v1381_v33 = vld [vmem:[#allocation2 + $0x268] sm:$0xf0]  ;;  %v1810_v37 = vpack.c.bf16 %v49_v27, %v49_v27 }
  0x37   :  { %750 = vmatpush.bf16.msrb.mxu3 %v1112_v22  ;;  %v1392_v22 = vor.u32 %v1626_v10, %v1389_v11  ;;  %v1592_v28 = vld [vmem:[#allocation2 + $0x164] sm:$0xf]  ;;  %v1144_v31 = vor.u32 %v1564_v18, %v1141_v19  ;;  %v1317_v39 = vld [vmem:[#allocation2 + $0x1e8] sm:$0xf0]  ;;  %v1245_v45 = vld [vmem:[#allocation2 + $0x158] sm:$0xf0] }
  0x38   :  { %724 = vmatpush.bf16.msrb.mxu1 %v1428_v29  ;;  %v1253_v29 = vld [vmem:[#allocation2 + $0x168] sm:$0xf0]  ;;  %v1624_v32 = vld [vmem:[#allocation2 + $0x264] sm:$0xf]  ;;  %v1622_v46 = vld [vmem:[#allocation2 + $0x254] sm:$0xf] }
  0x39   :  { %712 = vmatpush.bf16.msrb.mxu0 %v1356_v34  ;;  %1465 = vmatmul.msk.bf16.vlgmr.msrb.gmra.mxu2 %vm652_vm0, %v1798_v43  ;;  %v1328_v34 = vor.u32 %v1610_v20, %v1325_v23  ;;  %v1608_v36 = vld [vmem:[#allocation2 + $0x1e4] sm:$0xf]  ;;  %v1256_v38 = vor.u32 %v1592_v28, %v1253_v29  ;;  %v1445_v41 = vld [vmem:[#allocation2 + $0x2e8] sm:$0xf0]  ;;  %v1606_v50 = vld [vmem:[#allocation2 + $0x1d4] sm:$0xf] }
  0x3a   :  { %763 = vmatpush.bf16.msra.mxu2 %v1176_v30  ;;  %v1808_v30 = vpack.c.bf16 %v48_v15, %v48_v15  ;;  %v1640_v40 = vld [vmem:[#allocation2 + $0x2e4] sm:$0xf]  ;;  %v1309_v53 = vld [vmem:[#allocation2 + $0x1d8] sm:$0xf0]  ;;  %v1638_v54 = vld [vmem:[#allocation2 + $0x2d4] sm:$0xf] }
  0x3b   :  { %751 = vmatpush.bf16.msrb.mxu3 %v1104_v35  ;;  %v1456_v35 = vor.u32 %v1642_v24, %v1453_v25  ;;  %v1448_v49 = vor.u32 %v1640_v40, %v1445_v41  ;;  %v1437_v55 = vld [vmem:[#allocation2 + $0x2d8] sm:$0xf0]  ;;  %v1237_v59 = vld [vmem:[#allocation2 + $0x148] sm:$0xf0]  ;;  %v1620_v60 = vld [vmem:[#allocation2 + $0x244] sm:$0xf] }
  0x3c   :  { %725 = vmatpush.bf16.msrb.mxu1 %v1420_v42  ;;  %v1384_v42 = vor.u32 %v1624_v32, %v1381_v33  ;;  %v1365_v61 = vld [vmem:[#allocation2 + $0x248] sm:$0xf0]  ;;  %v1604_v0 = vld [vmem:[#allocation2 + $0x1c4] sm:$0xf]  ;;  %v1229_v9 = vld [vmem:[#allocation2 + $0x138] sm:$0xf0] }
  0x3d   :  { %713 = vmatpush.bf16.msrb.mxu0 %v1348_v47  ;;  %v1373_v47 = vld [vmem:[#allocation2 + $0x258] sm:$0xf0]  ;;  %v1301_v2 = vld [vmem:[#allocation2 + $0x1c8] sm:$0xf0]  ;;  %v1636_v5 = vld [vmem:[#allocation2 + $0x2c4] sm:$0xf]  ;;  %v1368_v7 = vor.u32 %v1620_v60, %v1365_v61 }
  0x3e   :  { %764 = vmatpush.bf16.msra.mxu2 %v1168_v44  ;;  %v1590_v44 = vld [vmem:[#allocation2 + $0x154] sm:$0xf]  ;;  %v1429_v6 = vld [vmem:[#allocation2 + $0x2c8] sm:$0xf0]  ;;  %v1304_v11 = vor.u32 %v1604_v0, %v1301_v2  ;;  %v1293_v14 = vld [vmem:[#allocation2 + $0x1b8] sm:$0xf0] }
  0x3f   :  { %752 = vmatpush.bf16.msrb.mxu3 %v1096_v48  ;;  %v1320_v48 = vor.u32 %v1608_v36, %v1317_v39  ;;  %v1248_v52 = vor.u32 %v1590_v44, %v1245_v45  ;;  %v1618_v10 = vld [vmem:[#allocation2 + $0x234] sm:$0xf]  ;;  %v1584_v18 = vld [vmem:[#allocation2 + $0x124] sm:$0xf]  ;;  %v1221_v19 = vld [vmem:[#allocation2 + $0x128] sm:$0xf0] }
  0x40   :  { %726 = vmatpush.bf16.msrb.mxu1 %v1412_v56  ;;  %v1376_v56 = vor.u32 %v1622_v46, %v1373_v47  ;;  %v1634_v15 = vld [vmem:[#allocation2 + $0x2b4] sm:$0xf]  ;;  %v1616_v20 = vld [vmem:[#allocation2 + $0x224] sm:$0xf]  ;;  %v1224_v25 = vor.u32 %v1584_v18, %v1221_v19  ;;  %v1413_v28 = vld [vmem:[#allocation2 + $0x2a8] sm:$0xf0] }
  0x41   :  { %714 = vmatpush.bf16.msrb.mxu0 %v1340_v62  ;;  %v1312_v62 = vor.u32 %v1606_v50, %v1309_v53  ;;  %v1600_v24 = vld [vmem:[#allocation2 + $0x1a4] sm:$0xf]  ;;  %v1213_v32 = vld [vmem:[#allocation2 + $0x118] sm:$0xf0]  ;;  %v1614_v33 = vld [vmem:[#allocation2 + $0x214] sm:$0xf] }
  0x42   :  { %765 = vmatpush.bf16.msra.mxu2 %v1160_v57  ;;  %v1588_v57 = vld [vmem:[#allocation2 + $0x144] sm:$0xf]  ;;  %v1277_v40 = vld [vmem:[#allocation2 + $0x198] sm:$0xf0]  ;;  %v1630_v41 = vld [vmem:[#allocation2 + $0x294] sm:$0xf] }
  0x43   :  { %753 = vmatpush.bf16.msrb.mxu3 %v1088_v63  ;;  %v1440_v63 = vor.u32 %v1638_v54, %v1437_v55  ;;  %v1240_v1 = vor.u32 %v1588_v57, %v1237_v59  ;;  %v1632_v27 = vld [vmem:[#allocation2 + $0x2a4] sm:$0xf]  ;;  %v1205_v46 = vld [vmem:[#allocation2 + $0x108] sm:$0xf0]  ;;  %v1653_v0 = vld [vmem:[%s1897_s3 + $0x38] sm:$0xff] }
  0x44   :  { %727 = vmatpush.bf16.msrb.mxu1 %v1404_v8  ;;  %v1586_v8 = vld [vmem:[#allocation2 + $0x134] sm:$0xf]  ;;  %v1416_v36 = vor.u32 %v1632_v27, %v1413_v28  ;;  %v1580_v45 = vld [vmem:[#allocation2 + $0x104] sm:$0xf]  ;;  %v1461_v50 = vld [vmem:[#allocation2 + $0x308] sm:$0xf0] }
  0x45   :  { %715 = vmatpush.bf16.msrb.mxu0 %v1332_v16  ;;  %v1232_v13 = vor.u32 %v1586_v8, %v1229_v9  ;;  %v1421_v16 = vld [vmem:[#allocation2 + $0x2b8] sm:$0xf0]  ;;  %v1612_v47 = vld [vmem:[#allocation2 + $0x204] sm:$0xf]  ;;  %v1208_v54 = vor.u32 %v1580_v45, %v1205_v46  ;;  %v1397_v60 = vld [vmem:[#allocation2 + $0x288] sm:$0xf0] }
  0x46   :  { %766 = vmatpush.bf16.msra.mxu2 %v1152_v12  ;;  %v1602_v12 = vld [vmem:[#allocation2 + $0x1b4] sm:$0xf]  ;;  %v1424_v23 = vor.u32 %v1634_v15, %v1421_v16  ;;  %v1596_v55 = vld [vmem:[#allocation2 + $0x184] sm:$0xf]  ;;  %v156_v8 = vld [vmem:[%s1896_s2] sm:$0x3] }
  0x47   :  { %754 = vmatpush.bf16.msrb.mxu3 %v1080_v17  ;;  %v1628_v59 = vld [vmem:[#allocation2 + $0x284] sm:$0xf]  ;;  %v1659_v19 = vld [vmem:[%s1897_s3 + $0x68] sm:$0xff]  ;;  %v1657_v27 = vld [vmem:[%s1897_s3 + $0x58] sm:$0xff]  ;;  %s1063_s2 = sshll.u32 %s1901_s7, 4  ;;  %s1064_s2 = int_to_ptr.hbm [resolvable:$true] %s1063_s2 }
  0x48   :  { %728 = vmatpush.bf16.msrb.mxu1 %v1396_v26  ;;  %716 = vmatmul.bf16.vlgmr.msrb.gmra.mxu0 %v1808_v30  ;;  %v1285_v26 = vld [vmem:[#allocation2 + $0x1a8] sm:$0xf0] }
  0x49   :  { %773 = vmatpush.bf16.msra.mxu0 %v1264_v21  ;;  %v1349_v21 = vld [vmem:[#allocation2 + $0x228] sm:$0xf0] }
  0x4a   :  { %767 = vmatpush.bf16.msra.mxu2 %v1144_v31  ;;  %755 = vmatmul.bf16.vlgmr.msrb.gmra.mxu3 %v1785_v58  ;;  %v1432_v58 = vor.u32 %v1636_v5, %v1429_v6  ;;  %v1352_v29 = vor.u32 %v1616_v20, %v1349_v21  ;;  %v1582_v31 = vld [vmem:[#allocation2 + $0x114] sm:$0xf]  ;;  %v1646_v6 = vld [vmem:[%s1897_s3] sm:$0xff] }
  0x4b   :  { %799 = vmatpush.bf16.msra.mxu3 %v1392_v22  ;;  %729 = vmatmul.bf16.vlgmr.msrb.gmra.mxu1 %v1810_v37  ;;  %v1296_v22 = vor.u32 %v1602_v12, %v1293_v14  ;;  %v1216_v39 = vor.u32 %v1582_v31, %v1213_v32  ;;  %v1656_v32 = vld [vmem:[%s1897_s3 + $0x50] sm:$0xff] }
  0x4c   :  { %786 = vmatpush.bf16.msra.mxu1 %v1328_v34  ;;  %v1341_v34 = vld [vmem:[#allocation2 + $0x218] sm:$0xf0] }
  0x4d   :  { %774 = vmatpush.bf16.msra.mxu0 %v1256_v38  ;;  %768 = vmatmul.bf16.vlgmr.msra.gmra.mxu2 %v1789_v4  ;;  %v1357_v4 = vld [vmem:[#allocation2 + $0x238] sm:$0xf0]  ;;  %v1598_v38 = vld [vmem:[#allocation2 + $0x194] sm:$0xf]  ;;  %v1344_v44 = vor.u32 %v1614_v33, %v1341_v34 }
  0x4e   :  { %812 = vmatpush.bf16.msrb.mxu2 %v1456_v35  ;;  %v1360_v17 = vor.u32 %v1618_v10, %v1357_v4  ;;  %v1288_v35 = vor.u32 %v1600_v24, %v1285_v26  ;;  %v1661_v4 = vld [vmem:[%s1897_s3 + $0x78] sm:$0xff] }
  0x4f   :  { %800 = vmatpush.bf16.msra.mxu3 %v1384_v42  ;;  %v1405_v42 = vld [vmem:[#allocation2 + $0x298] sm:$0xf0] }
  0x50   :  { %787 = vmatpush.bf16.msra.mxu1 %v1320_v48  ;;  %v1333_v48 = vld [vmem:[#allocation2 + $0x208] sm:$0xf0]  ;;  %v1408_v53 = vor.u32 %v1630_v41, %v1405_v42  ;;  %v159_v42 = vperm.slane %v156_v8, 1 }
  0x51   :  { %775 = vmatpush.bf16.msra.mxu0 %v1248_v52  ;;  %v1280_v52 = vor.u32 %v1598_v38, %v1277_v40  ;;  %v1336_v57 = vor.u32 %v1612_v47, %v1333_v48  ;;  %v1655_v38 = vld [vmem:[%s1897_s3 + $0x48] sm:$0xff] }
  0x52   :  { %813 = vmatpush.bf16.msrb.mxu2 %v1448_v49  ;;  %v1644_v49 = vld [vmem:[#allocation2 + $0x304] sm:$0xf] }
  0x53   :  { %801 = vmatpush.bf16.msra.mxu3 %v1376_v56  ;;  %v1269_v56 = vld [vmem:[#allocation2 + $0x188] sm:$0xf0]  ;;  %v1464_v61 = vor.u32 %v1644_v49, %v1461_v50 }
  0x54   :  { %788 = vmatpush.bf16.msra.mxu1 %v1312_v62  ;;  %v1272_v62 = vor.u32 %v1596_v55, %v1269_v56 }
  0x55   :  { %776 = vmatpush.bf16.msra.mxu0 %v1240_v1  ;;  %v1652_v1 = vld [vmem:[%s1897_s3 + $0x30] sm:$0xff] }
  0x56   :  { %814 = vmatpush.bf16.msrb.mxu2 %v1440_v63  ;;  %v1400_v63 = vor.u32 %v1628_v59, %v1397_v60 }
  0x57   :  { %802 = vmatpush.bf16.msra.mxu3 %v1368_v7 }
  0x58   :  { %789 = vmatpush.bf16.msra.mxu1 %v1304_v11 }
  0x59   :  { %777 = vmatpush.bf16.msra.mxu0 %v1232_v13  ;;  %v1660_v13 = vld [vmem:[%s1897_s3 + $0x70] sm:$0xff] }
  0x5a   :  { %815 = vmatpush.bf16.msrb.mxu2 %v1432_v58  ;;  %v158_v58 = vperm.slane %v156_v8, 0 }
  0x5b   :  { %803 = vmatpush.bf16.msra.mxu3 %v1360_v17 }
  0x5c   :  { %790 = vmatpush.bf16.msra.mxu1 %v1296_v22  ;;  %v1658_v22 = vld [vmem:[%s1897_s3 + $0x60] sm:$0xff] }
  0x5d   :  { %778 = vmatpush.bf16.msra.mxu0 %v1224_v25 }
  0x5e   :  { %816 = vmatpush.bf16.msrb.mxu2 %v1424_v23 }
  0x5f   :  { %804 = vmatpush.bf16.msra.mxu3 %v1352_v29 }
  0x60   :  { %791 = vmatpush.bf16.msra.mxu1 %v1288_v35 }
  0x61   :  { %779 = vmatpush.bf16.msra.mxu0 %v1216_v39  ;;  %v1654_v39 = vld [vmem:[%s1897_s3 + $0x40] sm:$0xff] }
  0x62   :  { %817 = vmatpush.bf16.msrb.mxu2 %v1416_v36 }
  0x63   :  { %805 = vmatpush.bf16.msra.mxu3 %v1344_v44 }
  0x64   :  { %792 = vmatpush.bf16.msra.mxu1 %v1280_v52 }
  0x65   :  { %780 = vmatpush.bf16.msra.mxu0 %v1208_v54 }
  0x66   :  { %818 = vmatpush.bf16.msrb.mxu2 %v1408_v53 }
  0x67   :  { %806 = vmatpush.bf16.msra.mxu3 %v1336_v57 }
  0x68   :  { %793 = vmatpush.bf16.msra.mxu1 %v1272_v62  ;;  %781 = vmatmul.bf16.vlgmr.msra.gmra.mxu0 %v1777_v51  ;;  %v1651_v51 = vld [vmem:[%s1897_s3 + $0x28] sm:$0xff] }
  0x69   :  { %832 = vmatpush.bf16.msrb.mxu0 %v1464_v61 }
  0x6a   :  { %807 = vmatmul.bf16.vlgmr.msra.gmra.mxu3 %v1808_v30  ;;  %819 = vmatpush.bf16.msrb.mxu2 %v1400_v63  ;;  %v1648_v30 = vld [vmem:[%s1897_s3 + $0x10] sm:$0xff] }
  0x6b   :  { %794 = vmatmul.bf16.vlgmr.msra.gmra.mxu1 %v1787_v3  ;;  %v1650_v3 = vld [vmem:[%s1897_s3 + $0x20] sm:$0xff]  ;;  %987 = vmatpush.bf16.msrb.mxu3 %v1661_v4 }
  0x6c   :  { %974 = vmatpush.bf16.msrb.mxu1 %v1653_v0  ;;  %v1671_v4 = vld [vmem:[%s1900_s6] ss:$0 sm:$0xff] }
  0x6d   :  { %820 = vmatmul.bf16.vlgmr.msrb.gmra.mxu2 %v1810_v37  ;;  %v1647_v37 = vld [vmem:[%s1897_s3 + $0x8] sm:$0xff] }
  0x6f   :  { %988 = vmatpush.bf16.msrb.mxu3 %v1660_v13 }
  0x70   :  { %975 = vmatpush.bf16.msrb.mxu1 %v1652_v1  ;;  %v1665_v1 = vld [vmem:[%s1899_s5 + $0x18] sm:$0xff] }
  0x71   :  { %1046 = vmatpush.bf16.msra.mxu0 %v1665_v1 }
  0x73   :  { %989 = vmatpush.bf16.msrb.mxu3 %v1659_v19 }
  0x74   :  { %976 = vmatpush.bf16.msrb.mxu1 %v1651_v51  ;;  %v1664_v51 = vld [vmem:[%s1899_s5 + $0x10] sm:$0xff] }
  0x75   :  { %1047 = vmatpush.bf16.msra.mxu0 %v1664_v51 }
  0x77   :  { %990 = vmatpush.bf16.msrb.mxu3 %v1658_v22 }
  0x78   :  { %1466 = vmatmul.msk.bf16.vlgmr.msrb.gmra.mxu0 %vm652_vm0, %v1798_v43  ;;  %977 = vmatpush.bf16.msrb.mxu1 %v1650_v3  ;;  %v1649_v43 = vld [vmem:[%s1897_s3 + $0x18] sm:$0xff]  ;;  %v1663_v3 = vld [vmem:[%s1899_s5 + $0x8] sm:$0xff] }
  0x79   :  { %1048 = vmatpush.bf16.msra.mxu0 %v1663_v3 }
  0x7b   :  { %991 = vmatpush.bf16.msrb.mxu3 %v1657_v27 }
  0x7c   :  { %978 = vmatpush.bf16.msrb.mxu1 %v1649_v43 }
  0x7f   :  { %992 = vmatpush.bf16.msrb.mxu3 %v1656_v32 }
  0x80   :  { %979 = vmatpush.bf16.msrb.mxu1 %v1648_v30 }
  0x83   :  { %993 = vmatpush.bf16.msrb.mxu3 %v1655_v38 }
  0x84   :  { %980 = vmatpush.bf16.msrb.mxu1 %v1647_v37  ;;  %v1662_v37 = vld [vmem:[%s1899_s5] sm:$0xff] }
  0x85   :  { %1049 = vmatpush.bf16.msra.mxu0 %v1662_v37 }
  0x87   :  { %994 = vmatpush.bf16.msrb.mxu3 %v1654_v39 }
  0x88   :  { %981 = vmatpush.bf16.msrb.mxu1 %v1646_v6 }
  0xa5   :  { %v665_v2 = vpop.f32.mrf.mxu0 }
  0xa6   :  { %v666_v14 = vadd.f32 %v665_v2, %v158_v58  ;;  %v1670_v2 = vld [vmem:[%s1898_s4] ss:$0 sm:$0xff] }
  0xa8   :  { %v678_v5 = vpop.f32.mrf.mxu1 }
  0xa9   :  { %v679_v16 = vadd.f32 %v678_v5, %v666_v14 }
  0xac   :  { %v691_v7 = vpop.f32.mrf.mxu2 }
  0xad   :  { %v704_v9 = vpop.f32.mrf.mxu3  ;;  %v667_v10 = vpop.f32.mrf.mxu0  ;;  %v692_v18 = vadd.f32 %v691_v7, %v679_v16 }
  0xaf   :  { %v705_v20 = vadd.f32 %v704_v9, %v692_v18 }
  0xb0   :  { %v680_v11 = vpop.f32.mrf.mxu1 }
  0xb4   :  { %v693_v12 = vpop.f32.mrf.mxu2 }
  0xb5   :  { %v706_v15 = vpop.f32.mrf.mxu3 }
  0xbc   :  { %v743_v17 = vpop.f32.mrf.mxu2 }
  0xc4   :  { %v745_v24 = vpop.f32.mrf.mxu2 }
  0xc5   :  { %v717_v21 = vpop.f32.mrf.mxu0 }
  0xc6   :  { %v718_v23 = vadd.f32 %v717_v21, %v705_v20 }
  0xc8   :  { %v730_v25 = vpop.f32.mrf.mxu1 }
  0xc9   :  { %v731_v26 = vadd.f32 %v730_v25, %v718_v23 }
  0xcb   :  { %v744_v28 = vadd.f32 %v743_v17, %v731_v26 }
  0xcd   :  { %v838_v29 = vmax.f32 %v744_v28, 0.0  ;;  %v719_v31 = vpop.f32.mrf.mxu0  ;;  %v756_v35 = vpop.f32.mrf.mxu3 }
  0xce   :  { %v757_v44 = vadd.f32 %v756_v35, %v159_v42 }
  0xcf   :  { %v840_v33 = vpack.c.bf16 %v838_v29, %v838_v29 }
  0xd0   :  { %v769_v34 = vpop.f32.mrf.mxu2  ;;  %v732_v36 = vpop.f32.mrf.mxu1 }
  0xd1   :  { %982 = vmatmul.bf16.vlgmr.msrb.gmra.mxu1 %v840_v33  ;;  %v770_v46 = vadd.f32 %v769_v34, %v757_v44 }
  0xd5   :  { %v758_v41 = vpop.f32.mrf.mxu3 }
  0xd8   :  { %v771_v40 = vpop.f32.mrf.mxu2 }
  0xe5   :  { %v782_v45 = vpop.f32.mrf.mxu0 }
  0xe6   :  { %v783_v48 = vadd.f32 %v782_v45, %v770_v46 }
  0xe8   :  { %v795_v47 = vpop.f32.mrf.mxu1 }
  0xe9   :  { %v796_v52 = vadd.f32 %v795_v47, %v783_v48 }
  0xed   :  { %v808_v49 = vpop.f32.mrf.mxu3  ;;  %v784_v50 = vpop.f32.mrf.mxu0 }
  0xee   :  { %v809_v54 = vadd.f32 %v808_v49, %v796_v52 }
  0xf0   :  { %v821_v53 = vpop.f32.mrf.mxu2  ;;  %v797_v55 = vpop.f32.mrf.mxu1 }
  0xf1   :  { %v822_v56 = vadd.f32 %v821_v53, %v809_v54 }
  0xf5   :  { %v810_v57 = vpop.f32.mrf.mxu3  ;;  %v834_v59 = vpop.f32.mrf.mxu0 }
  0xf6   :  { %v835_v60 = vadd.f32 %v834_v59, %v822_v56 }
  0xf8   :  { %v823_v61 = vpop.f32.mrf.mxu2  ;;  %v839_v62 = vmax.f32 %v835_v60, 0.0 }
  0xfa   :  { %v841_v63 = vpack.c.bf16 %v839_v62, %v839_v62 }
  0xfc   :  { %995 = vmatmul.bf16.vlgmr.msrb.gmra.mxu3 %v841_v63 }
  0xfd   :  { %v836_v0 = vpop.f32.mrf.mxu0 }
 0x14e   :  { %v983_v43 = vpop.f32.mrf.mxu1 }
 0x14f   :  { %v984_v5 = vadd.f32 %v1670_v2, %v983_v43 }
 0x156   :  { %v985_v30 = vpop.f32.mrf.mxu1 }
 0x17f   :  { %v996_v6 = vpop.f32.mrf.mxu3 }
 0x180   :  { %v997_v7 = vadd.f32 %v996_v6, %v984_v5 }
 0x182   :  { %v1000_v8 = vmax.f32 %v997_v7, 0.0 }
 0x184   :  { %v1001_v9 = vpack.c.bf16 %v1000_v8, %v1000_v8 }
 0x186   :  { %1547 = vmatmul.msk.bf16.vlgmr.msra.gmra.mxu0 %vm1038_vm1, %v1001_v9 }
 0x187   :  { %v998_v10 = vpop.f32.mrf.mxu3 }
 0x203   :  { %v1051_v11 = vpop.f32.mrf.mxu0 }
 0x204   :  { %v1052_v58 = vadd.f32 %v1671_v4, %v1051_v11 }
 0x206   :  { %1055 = vst [vmem:[#allocation5] sm:$0xff] %v1052_v58 }
 0x207   :  { %1066 = dma.vmem_to_hbm [thread:$0]  %s1062_s16, 128, %s1064_s2, [#allocation4]  }
 0x20b   :  { %v1053_v12 = vpop.f32.mrf.mxu0 }
 0x20c   :  { %1722 = dma.done.wait [#allocation4], 128  }
 0x20d   :  { %1723 = vsyncadd [#allocation4], 4294967168 }
 0x20e   :  { %1071 = vsyncpa [#allocation3], 1 }
 0x20f   :  { %1072 = vsyncpa [#allocation4], 1 }

</bundles_post_ra>
